<compile_context>
chip_gen: v7x
topology: tpu7x:2x2x1
jax: 0.10.0
libtpu: 0.0.40
codegen_flags: <defaults>
</compile_context>

<pallas_src>
import functools

import jax
import jax.numpy as jnp
import numpy as np
from jax.experimental import pallas as pl
from jax.experimental.pallas import tpu as pltpu


# --------------------------------------------------------------------------
# Fused Pallas kernel: ONE invocation == full forward for BOTH graphs
# --------------------------------------------------------------------------
def _fused_gcn_kernel(x_ref, a_ref, p_ref, fcw_ref, bias_ref,
                      w1_ref, w2_ref, z_ref, *, in_feats, hidden):
    f32, bf16 = jnp.float32, jnp.bfloat16

    w1 = w1_ref[...]                         # (in_feats, hidden) bf16, shared
    w2 = w2_ref[...]                         # (hidden, hidden)   bf16, shared
    b1 = bias_ref[2:3, :hidden]              # (1, hidden) f32
    b2 = bias_ref[3:4, :hidden]              # (1, hidden) f32

    # Unrolled over the two graphs -> two independent MXU chains the LLO
    # scheduler can interleave inside the single grid step.
    for g in range(2):
        x = x_ref[g]                         # (Npad, Kpad) bf16 node features
        a = a_ref[g]                         # (Npad, Npad) bf16 normalized adjacency
        p = p_ref[g]                         # (B,   Npad)  f32  mean-pool matrix
        fcb = bias_ref[g:g + 1, :in_feats]   # (1, in_feats) f32 (fcl / fcr bias)

        # fcl / fcr linear
        h = jnp.dot(x, fcw_ref[g], preferred_element_type=f32) + fcb

        # conv1: Ahat @ (H @ W1) + b1, ReLU.  Re-associate to (Ahat @ H) @ W1
        # when in_feats <= hidden: the N^2 matmul then carries the narrower dim.
        if in_feats <= hidden:
            ah = jnp.dot(a, h.astype(bf16), preferred_element_type=f32)
            h1 = jnp.dot(ah.astype(bf16), w1, preferred_element_type=f32) + b1
        else:
            t1 = jnp.dot(h.astype(bf16), w1, preferred_element_type=f32)
            h1 = jnp.dot(a, t1.astype(bf16), preferred_element_type=f32) + b1
        h1 = jnp.maximum(h1, 0.0)

        # conv2: Ahat @ (H1 @ W2) + b2   (no activation)
        t2 = jnp.dot(h1.astype(bf16), w2, preferred_element_type=f32)
        h2 = jnp.dot(a, t2.astype(bf16), preferred_element_type=f32) + b2

        # global mean pool -> (B, hidden); fc1 halves + bias run outside.
        z_ref[g] = jnp.dot(p, h2, preferred_element_type=f32)


# --------------------------------------------------------------------------
# Graph glue (dense normalized adjacency, pooling matrix) -- plain JAX
# --------------------------------------------------------------------------
def gcn_norm_dense(edge_index, num_nodes):
    """Ahat = D^{-1/2}(A + remaining self-loops)D^{-1/2} (PyG GCNConv default)."""
    src, dst = edge_index[0], edge_index[1]
    A = jnp.zeros((num_nodes, num_nodes), jnp.float32)
    A = A.at[dst, src].add(1.0)
    diag = jnp.diagonal(A)
    # add_remaining_self_loops: only add where no self-loop already exists.
    A = A + jnp.diag(jnp.where(diag > 0, 0.0, 1.0))
    deg = A.sum(axis=1)
    dinv = jnp.where(deg > 0, 1.0 / jnp.sqrt(deg), 0.0)
    return dinv[:, None] * A * dinv[None, :]


def mean_pool_matrix(batch, num_graphs, num_nodes):
    """P[b, n] = 1/|graph b| if batch[n] == b else 0  (global_mean_pool)."""
    onehot = (batch[None, :] == jnp.arange(num_graphs)[:, None]).astype(jnp.float32)
    counts = onehot.sum(axis=1, keepdims=True)
    return onehot / jnp.maximum(counts, 1.0)


# --------------------------------------------------------------------------
# GCN forward (mirrors the PyTorch module's forward) — single pallas_call
# --------------------------------------------------------------------------
def gcn_forward(params, g1, g2):
    x1, ei1, batch1, B1 = g1
    x2, ei2, batch2, B2 = g2
    assert B1 == B2
    B = B1

    N1, K1 = x1.shape
    N2, K2 = x2.shape
    Npad = max(N1, N2)
    Kpad = max(K1, K2)
    in_feats = params["conv1_w"].shape[0]
    hidden = params["conv2_w"].shape[1]
    bw = max(in_feats, hidden)

    def pad2(m, r, c):
        m = m.astype(jnp.float32)
        return jnp.pad(m, ((0, r - m.shape[0]), (0, c - m.shape[1])))

    # Dense graph operators (zero-padded rows/cols for pad nodes are inert:
    # Ahat / P have zero columns there, so pad rows never contaminate results).
    A1 = gcn_norm_dense(ei1, N1)
    A2 = gcn_norm_dense(ei2, N2)
    P1 = mean_pool_matrix(batch1, B, N1)
    P2 = mean_pool_matrix(batch2, B, N2)

    bf16 = jnp.bfloat16
    x_stk = jnp.stack([pad2(x1, Npad, Kpad),
                       pad2(x2, Npad, Kpad)]).astype(bf16)         # (2,Npad,Kpad)
    a_stk = jnp.stack([pad2(A1, Npad, Npad),
                       pad2(A2, Npad, Npad)]).astype(bf16)         # (2,Npad,Npad)
    p_stk = jnp.stack([pad2(P1, B, Npad),
                       pad2(P2, B, Npad)])                          # (2,B,Npad) f32
    fcw_stk = jnp.stack([pad2(params["fcl_w"], Kpad, in_feats),
                         pad2(params["fcr_w"], Kpad, in_feats)]).astype(bf16)
    w1 = params["conv1_w"].astype(bf16)                             # (in_feats,hidden)
    w2 = params["conv2_w"].astype(bf16)                             # (hidden,hidden)

    # All four small biases packed into ONE VMEM buffer (single DMA).
    bias_pack = jnp.zeros((4, bw), jnp.float32)
    bias_pack = bias_pack.at[0, :in_feats].set(params["fcl_b"])
    bias_pack = bias_pack.at[1, :in_feats].set(params["fcr_b"])
    bias_pack = bias_pack.at[2, :hidden].set(params["conv1_b"])
    bias_pack = bias_pack.at[3, :hidden].set(params["conv2_b"])

    # Advisory cost estimate so XLA schedules the surrounding glue sensibly.
    flops_one = 2 * (Npad * Kpad * in_feats      # fcl/fcr
                     + Npad * Npad * in_feats    # Ahat @ h   (re-associated)
                     + Npad * in_feats * hidden  # @ W1
                     + Npad * hidden * hidden    # h1 @ W2
                     + Npad * Npad * hidden      # Ahat @ t2
                     + B * Npad * hidden)        # pooling
    bytes_accessed = int(x_stk.size * 2 + a_stk.size * 2 + fcw_stk.size * 2
                         + w1.size * 2 + w2.size * 2
                         + p_stk.size * 4 + bias_pack.size * 4
                         + 2 * B * hidden * 4)

    z_stk = pl.pallas_call(
        functools.partial(_fused_gcn_kernel, in_feats=in_feats, hidden=hidden),
        out_shape=jax.ShapeDtypeStruct((2, B, hidden), jnp.float32),
        # No grid / specs: single invocation, all operands whole-array in VMEM.
        compiler_params=pltpu.CompilerParams(vmem_limit_bytes=64 << 20),
        cost_estimate=pl.CostEstimate(flops=2 * flops_one,
                                      transcendentals=0,
                                      bytes_accessed=bytes_accessed),
    )(x_stk, a_stk, p_stk, fcw_stk, bias_pack, w1, w2)

    # fc1(cat([z1, z2])) in plain XLA (tiny): keeps the kernel output lane-dense
    # and removes a serial 2-wide MXU pass from the kernel's critical path.
    z_cat = jnp.concatenate([z_stk[0], z_stk[1]], axis=1)           # (B, 2*hidden)
    out = jnp.dot(z_cat, params["fc1_w"]) + params["fc1_b"]         # (B, 2)
    # TODO(synk): self.fc and self.bn are defined in the PyTorch __init__ but
    # unused in forward(), so they are intentionally not implemented here.
    return (0, out, 0, 0)


# --------------------------------------------------------------------------
# Deterministic parameter / input construction
# --------------------------------------------------------------------------
def init_params(key, multi_numROI, in_feats, hidden_size, out_size):
    ks = jax.random.split(key, 8)

    def lin_t(kw, kb, out_f, in_f):
        # PyTorch nn.Linear-style init, pre-transposed ONCE to (in, out) so the
        # forward pass never emits an XLA transpose.
        bound = 1.0 / np.sqrt(in_f)
        w = jax.random.uniform(kw, (out_f, in_f), jnp.float32, -bound, bound)
        b = jax.random.uniform(kb, (out_f,), jnp.float32, -bound, bound)
        return w.T, b

    fcl_w, fcl_b = lin_t(ks[0], ks[1], in_feats, multi_numROI[0] + 3)
    fcr_w, fcr_b = lin_t(ks[2], ks[3], in_feats, multi_numROI[1] + 3)
    # GCNConv weight stored as (in, out); bias (out,)
    conv1_w = jax.random.normal(ks[4], (in_feats, hidden_size), jnp.float32) * 0.1
    conv1_b = jnp.zeros((hidden_size,), jnp.float32)
    conv2_w = jax.random.normal(ks[5], (hidden_size, hidden_size), jnp.float32) * 0.1
    conv2_b = jnp.zeros((hidden_size,), jnp.float32)
    fc1_w, fc1_b = lin_t(ks[6], ks[7], 2, hidden_size * 2)   # (2*hidden, 2)
    return dict(
        fcl_w=fcl_w, fcl_b=fcl_b, fcr_w=fcr_w, fcr_b=fcr_b,
        conv1_w=conv1_w, conv1_b=conv1_b,
        conv2_w=conv2_w, conv2_b=conv2_b,
        fc1_w=fc1_w, fc1_b=fc1_b,
    )


def make_batched_graph(key, num_graphs, nodes_per_graph, feat_dim):
    """Ring-connected undirected graph per batch element (deterministic)."""
    n = num_graphs * nodes_per_graph
    x = jax.random.normal(key, (n, feat_dim), jnp.float32)
    src, dst = [], []
    for g in range(num_graphs):
        off = g * nodes_per_graph
        for i in range(nodes_per_graph):
            j = (i + 1) % nodes_per_graph
            src += [off + i, off + j]
            dst += [off + j, off + i]
    edge_index = jnp.array([src, dst], dtype=jnp.int32)
    batch = jnp.repeat(jnp.arange(num_graphs, dtype=jnp.int32), nodes_per_graph)
    return x, edge_index, batch, num_graphs


if __name__ == "__main__":
    multi_numROI = [13, 13]     # so fcl/fcr input dims are 16
    in_feats, hidden_size, out_size = 16, 32, 2
    num_graphs, nodes_per_graph = 2, 8

    key = jax.random.PRNGKey(0)
    kp, k1, k2 = jax.random.split(key, 3)
    params = init_params(kp, multi_numROI, in_feats, hidden_size, out_size)

    g1 = make_batched_graph(k1, num_graphs, nodes_per_graph, multi_numROI[0] + 3)
    g2 = make_batched_graph(k2, num_graphs, nodes_per_graph, multi_numROI[1] + 3)

    _, out, _, _ = gcn_forward(params, g1, g2)
    out = jax.block_until_ready(out)
    assert out.shape == (num_graphs, 2)
    assert bool(jnp.all(jnp.isfinite(out)))
    print("KERNEL_OK")
</pallas_src>

<mosaic_0001>
module attributes {stable_mosaic.version = 11 : i64} {
  func.func @_fused_gcn_kernel(%arg0: memref<2x16x16xbf16, #tpu.memory_space<vmem>>, %arg1: memref<2x16x16xbf16, #tpu.memory_space<vmem>>, %arg2: memref<2x2x16xf32, #tpu.memory_space<vmem>>, %arg3: memref<2x16x16xbf16, #tpu.memory_space<vmem>>, %arg4: memref<4x32xf32, #tpu.memory_space<vmem>>, %arg5: memref<16x32xbf16, #tpu.memory_space<vmem>>, %arg6: memref<32x32xbf16, #tpu.memory_space<vmem>>, %arg7: memref<2x2x32xf32, #tpu.memory_space<vmem>>) attributes {dimension_semantics = [], scalar_prefetch = 0 : i64, scratch_operands = 0 : i64, tpu.core_type = #tpu.core_type<tc>} {
    %c0 = arith.constant 0 : index
    %c0_0 = arith.constant 0 : index
    %0 = vector.load %arg5[%c0, %c0_0] : memref<16x32xbf16, #tpu.memory_space<vmem>>, vector<16x32xbf16>
    %c0_1 = arith.constant 0 : index
    %c0_2 = arith.constant 0 : index
    %1 = vector.load %arg6[%c0_1, %c0_2] : memref<32x32xbf16, #tpu.memory_space<vmem>>, vector<32x32xbf16>
    %c2 = arith.constant 2 : index
    %c0_3 = arith.constant 0 : index
    %2 = vector.load %arg4[%c2, %c0_3] : memref<4x32xf32, #tpu.memory_space<vmem>>, vector<1x32xf32>
    %c3 = arith.constant 3 : index
    %c0_4 = arith.constant 0 : index
    %3 = vector.load %arg4[%c3, %c0_4] : memref<4x32xf32, #tpu.memory_space<vmem>>, vector<1x32xf32>
    %c0_5 = arith.constant 0 : index
    %c0_6 = arith.constant 0 : index
    %c0_7 = arith.constant 0 : index
    %4 = vector.load %arg0[%c0_5, %c0_6, %c0_7] : memref<2x16x16xbf16, #tpu.memory_space<vmem>>, vector<1x16x16xbf16>
    %5 = vector.shape_cast %4 : vector<1x16x16xbf16> to vector<16x16xbf16>
    %c0_8 = arith.constant 0 : index
    %c0_9 = arith.constant 0 : index
    %c0_10 = arith.constant 0 : index
    %6 = vector.load %arg1[%c0_8, %c0_9, %c0_10] : memref<2x16x16xbf16, #tpu.memory_space<vmem>>, vector<1x16x16xbf16>
    %7 = vector.shape_cast %6 : vector<1x16x16xbf16> to vector<16x16xbf16>
    %c0_11 = arith.constant 0 : index
    %c0_12 = arith.constant 0 : index
    %c0_13 = arith.constant 0 : index
    %8 = vector.load %arg2[%c0_11, %c0_12, %c0_13] : memref<2x2x16xf32, #tpu.memory_space<vmem>>, vector<1x2x16xf32>
    %9 = vector.shape_cast %8 : vector<1x2x16xf32> to vector<2x16xf32>
    %c0_14 = arith.constant 0 : index
    %c0_15 = arith.constant 0 : index
    %10 = vector.load %arg4[%c0_14, %c0_15] : memref<4x32xf32, #tpu.memory_space<vmem>>, vector<1x16xf32>
    %c0_16 = arith.constant 0 : index
    %c0_17 = arith.constant 0 : index
    %c0_18 = arith.constant 0 : index
    %11 = vector.load %arg3[%c0_16, %c0_17, %c0_18] : memref<2x16x16xbf16, #tpu.memory_space<vmem>>, vector<1x16x16xbf16>
    %12 = vector.shape_cast %11 : vector<1x16x16xbf16> to vector<16x16xbf16>
    %cst = arith.constant dense<0.000000e+00> : vector<16x16xf32>
    %13 = tpu.matmul %5, %12, %cst {dimension_numbers = #tpu.dot_dimension_numbers<[1], [0], [0], [1], [0, 0, 1, 1], [], []>} : vector<16x16xbf16>, vector<16x16xbf16>, vector<16x16xf32> -> vector<16x16xf32>
    %14 = vector.broadcast %10 : vector<1x16xf32> to vector<16x16xf32>
    %15 = arith.addf %13, %14 : vector<16x16xf32>
    %16 = arith.truncf %15 : vector<16x16xf32> to vector<16x16xbf16>
    %cst_19 = arith.constant dense<0.000000e+00> : vector<16x16xf32>
    %17 = tpu.matmul %7, %16, %cst_19 {dimension_numbers = #tpu.dot_dimension_numbers<[1], [0], [0], [1], [0, 0, 1, 1], [], []>} : vector<16x16xbf16>, vector<16x16xbf16>, vector<16x16xf32> -> vector<16x16xf32>
    %18 = arith.truncf %17 : vector<16x16xf32> to vector<16x16xbf16>
    %cst_20 = arith.constant dense<0.000000e+00> : vector<16x32xf32>
    %19 = tpu.matmul %18, %0, %cst_20 {dimension_numbers = #tpu.dot_dimension_numbers<[1], [0], [0], [1], [0, 0, 1, 1], [], []>} : vector<16x16xbf16>, vector<16x32xbf16>, vector<16x32xf32> -> vector<16x32xf32>
    %20 = vector.broadcast %2 : vector<1x32xf32> to vector<16x32xf32>
    %21 = arith.addf %19, %20 : vector<16x32xf32>
    %cst_21 = arith.constant 0.000000e+00 : f32
    %22 = vector.broadcast %cst_21 : f32 to vector<16x32xf32>
    %23 = arith.maximumf %21, %22 : vector<16x32xf32>
    %24 = arith.truncf %23 : vector<16x32xf32> to vector<16x32xbf16>
    %cst_22 = arith.constant dense<0.000000e+00> : vector<16x32xf32>
    %25 = tpu.matmul %24, %1, %cst_22 {dimension_numbers = #tpu.dot_dimension_numbers<[1], [0], [0], [1], [0, 0, 1, 1], [], []>} : vector<16x32xbf16>, vector<32x32xbf16>, vector<16x32xf32> -> vector<16x32xf32>
    %26 = arith.truncf %25 : vector<16x32xf32> to vector<16x32xbf16>
    %cst_23 = arith.constant dense<0.000000e+00> : vector<16x32xf32>
    %27 = tpu.matmul %7, %26, %cst_23 {dimension_numbers = #tpu.dot_dimension_numbers<[1], [0], [0], [1], [0, 0, 1, 1], [], []>} : vector<16x16xbf16>, vector<16x32xbf16>, vector<16x32xf32> -> vector<16x32xf32>
    %28 = vector.broadcast %3 : vector<1x32xf32> to vector<16x32xf32>
    %29 = arith.addf %27, %28 : vector<16x32xf32>
    %cst_24 = arith.constant dense<0.000000e+00> : vector<2x32xf32>
    %30 = tpu.matmul %9, %29, %cst_24 {dimension_numbers = #tpu.dot_dimension_numbers<[1], [0], [0], [1], [0, 0, 1, 1], [], []>} : vector<2x16xf32>, vector<16x32xf32>, vector<2x32xf32> -> vector<2x32xf32>
    %c0_25 = arith.constant 0 : index
    %c0_26 = arith.constant 0 : index
    %c0_27 = arith.constant 0 : index
    %31 = vector.load %arg7[%c0_25, %c0_26, %c0_27] : memref<2x2x32xf32, #tpu.memory_space<vmem>>, vector<1x2x32xf32>
    %32 = vector.shape_cast %31 : vector<1x2x32xf32> to vector<2x32xf32>
    %33 = vector.shape_cast %30 : vector<2x32xf32> to vector<1x2x32xf32>
    tpu.vector_store %arg7[%c0_25, %c0_26, %c0_27], %33 {strides = array<i32>} : memref<2x2x32xf32, #tpu.memory_space<vmem>>, vector<1x2x32xf32>,
    %c1 = arith.constant 1 : index
    %c0_28 = arith.constant 0 : index
    %c0_29 = arith.constant 0 : index
    %34 = vector.load %arg0[%c1, %c0_28, %c0_29] : memref<2x16x16xbf16, #tpu.memory_space<vmem>>, vector<1x16x16xbf16>
    %35 = vector.shape_cast %34 : vector<1x16x16xbf16> to vector<16x16xbf16>
    %c1_30 = arith.constant 1 : index
    %c0_31 = arith.constant 0 : index
    %c0_32 = arith.constant 0 : index
    %36 = vector.load %arg1[%c1_30, %c0_31, %c0_32] : memref<2x16x16xbf16, #tpu.memory_space<vmem>>, vector<1x16x16xbf16>
    %37 = vector.shape_cast %36 : vector<1x16x16xbf16> to vector<16x16xbf16>
    %c1_33 = arith.constant 1 : index
    %c0_34 = arith.constant 0 : index
    %c0_35 = arith.constant 0 : index
    %38 = vector.load %arg2[%c1_33, %c0_34, %c0_35] : memref<2x2x16xf32, #tpu.memory_space<vmem>>, vector<1x2x16xf32>
    %39 = vector.shape_cast %38 : vector<1x2x16xf32> to vector<2x16xf32>
    %c1_36 = arith.constant 1 : index
    %c0_37 = arith.constant 0 : index
    %40 = vector.load %arg4[%c1_36, %c0_37] : memref<4x32xf32, #tpu.memory_space<vmem>>, vector<1x16xf32>
    %c1_38 = arith.constant 1 : index
    %c0_39 = arith.constant 0 : index
    %c0_40 = arith.constant 0 : index
    %41 = vector.load %arg3[%c1_38, %c0_39, %c0_40] : memref<2x16x16xbf16, #tpu.memory_space<vmem>>, vector<1x16x16xbf16>
    %42 = vector.shape_cast %41 : vector<1x16x16xbf16> to vector<16x16xbf16>
    %cst_41 = arith.constant dense<0.000000e+00> : vector<16x16xf32>
    %43 = tpu.matmul %35, %42, %cst_41 {dimension_numbers = #tpu.dot_dimension_numbers<[1], [0], [0], [1], [0, 0, 1, 1], [], []>} : vector<16x16xbf16>, vector<16x16xbf16>, vector<16x16xf32> -> vector<16x16xf32>
    %44 = vector.broadcast %40 : vector<1x16xf32> to vector<16x16xf32>
    %45 = arith.addf %43, %44 : vector<16x16xf32>
    %46 = arith.truncf %45 : vector<16x16xf32> to vector<16x16xbf16>
    %cst_42 = arith.constant dense<0.000000e+00> : vector<16x16xf32>
    %47 = tpu.matmul %37, %46, %cst_42 {dimension_numbers = #tpu.dot_dimension_numbers<[1], [0], [0], [1], [0, 0, 1, 1], [], []>} : vector<16x16xbf16>, vector<16x16xbf16>, vector<16x16xf32> -> vector<16x16xf32>
    %48 = arith.truncf %47 : vector<16x16xf32> to vector<16x16xbf16>
    %cst_43 = arith.constant dense<0.000000e+00> : vector<16x32xf32>
    %49 = tpu.matmul %48, %0, %cst_43 {dimension_numbers = #tpu.dot_dimension_numbers<[1], [0], [0], [1], [0, 0, 1, 1], [], []>} : vector<16x16xbf16>, vector<16x32xbf16>, vector<16x32xf32> -> vector<16x32xf32>
    %50 = vector.broadcast %2 : vector<1x32xf32> to vector<16x32xf32>
    %51 = arith.addf %49, %50 : vector<16x32xf32>
    %cst_44 = arith.constant 0.000000e+00 : f32
    %52 = vector.broadcast %cst_44 : f32 to vector<16x32xf32>
    %53 = arith.maximumf %51, %52 : vector<16x32xf32>
    %54 = arith.truncf %53 : vector<16x32xf32> to vector<16x32xbf16>
    %cst_45 = arith.constant dense<0.000000e+00> : vector<16x32xf32>
    %55 = tpu.matmul %54, %1, %cst_45 {dimension_numbers = #tpu.dot_dimension_numbers<[1], [0], [0], [1], [0, 0, 1, 1], [], []>} : vector<16x32xbf16>, vector<32x32xbf16>, vector<16x32xf32> -> vector<16x32xf32>
    %56 = arith.truncf %55 : vector<16x32xf32> to vector<16x32xbf16>
    %cst_46 = arith.constant dense<0.000000e+00> : vector<16x32xf32>
    %57 = tpu.matmul %37, %56, %cst_46 {dimension_numbers = #tpu.dot_dimension_numbers<[1], [0], [0], [1], [0, 0, 1, 1], [], []>} : vector<16x16xbf16>, vector<16x32xbf16>, vector<16x32xf32> -> vector<16x32xf32>
    %58 = vector.broadcast %3 : vector<1x32xf32> to vector<16x32xf32>
    %59 = arith.addf %57, %58 : vector<16x32xf32>
    %cst_47 = arith.constant dense<0.000000e+00> : vector<2x32xf32>
    %60 = tpu.matmul %39, %59, %cst_47 {dimension_numbers = #tpu.dot_dimension_numbers<[1], [0], [0], [1], [0, 0, 1, 1], [], []>} : vector<2x16xf32>, vector<16x32xf32>, vector<2x32xf32> -> vector<2x32xf32>
    %c1_48 = arith.constant 1 : index
    %c0_49 = arith.constant 0 : index
    %c0_50 = arith.constant 0 : index
    %61 = vector.load %arg7[%c1_48, %c0_49, %c0_50] : memref<2x2x32xf32, #tpu.memory_space<vmem>>, vector<1x2x32xf32>
    %62 = vector.shape_cast %61 : vector<1x2x32xf32> to vector<2x32xf32>
    %63 = vector.shape_cast %60 : vector<2x32xf32> to vector<1x2x32xf32>
    tpu.vector_store %arg7[%c1_48, %c0_49, %c0_50], %63 {strides = array<i32>} : memref<2x2x32xf32, #tpu.memory_space<vmem>>, vector<1x2x32xf32>,
    return
  }
}

</mosaic_0001>

<bundles_post_ra>
// kernel: tpu_custom_call.1
= control target key start
LH: loop header
LB: loop body
LE: loop exit
PB: predicated region body
PF: predicated region fallthrough
CT: control target
= control target key end

     0   :  { %12 = vsyncpa [#allocation3], 0  ;;  %s1436_s0 = inlined_call_operand.hbm [shape: bf16[2,16,16], index: 0, kind: input, shape index: {}]   ;;  %s1437_s1 = inlined_call_operand.hbm [shape: bf16[2,16,16], index: 1, kind: input, shape index: {}]   ;;  %s1438_s2 = inlined_call_operand.hbm [shape: f32[2,2,16], index: 2, kind: input, shape index: {}]   ;;  %s1439_s3 = inlined_call_operand.hbm [shape: bf16[2,16,16], index: 3, kind: input, shape index: {}]   ;;  %s1440_s4 = inlined_call_operand.hbm [shape: f32[4,32], index: 4, kind: input, shape index: {}]   ;;  %s1441_s5 = inlined_call_operand.hbm [shape: bf16[16,32], index: 5, kind: input, shape index: {}]   ;;  %s1442_s6 = inlined_call_operand.hbm [shape: bf16[32,32], index: 6, kind: input, shape index: {}]   ;;  %s1443_s7 = inlined_call_operand.hbm [shape: f32[2,2,32], index: 7, kind: output, shape index: {}]  }
   0x1   :  { %13 = vsyncpa [#allocation6], 0 }
   0x2   :  { %14 = vsyncpa [#allocation9], 0 }
   0x3   :  { %15 = vsyncpa [#allocation12], 0 }
   0x4   :  { %16 = vsyncpa [#allocation4], 0  ;;  %s1180_s24 = smov [#allocation5]   ;;  %s1181_s26 = smov [#allocation8]  }
   0x5   :  { %s34_s25 = sshll.u32 %s1180_s24, 4  ;;  %s58_s27 = sshll.u32 %s1181_s26, 4  ;;  %s35_s25 = int_to_ptr.vmem [resolvable:$true] %s34_s25  ;;  %s1235_s27 = int_to_ptr.vmem [resolvable:$true] %s58_s27 }
   0x6   :  { %s994_s30 = scalar_lea.hbm %s1437_s1, 256 }
   0x7   :  { %p995_p0 = scmp.ne.s32.totalorder %s1437_s1, %s994_s30  ;;  %p998_p1 = scmp.lt.u32.totalorder %s994_s30, %s1437_s1 }
   0x9   :  { %p1000_p2 = pnand %p998_p1, %p995_p0 }
   0xb   :  { %1003 = shalt.err (!%p1000_p2)
}
   0xc   :  { %s1004_s12 = scalar_lea.vmem %s35_s25, 256  ;;  %p1009_p4 = scmp.lt.s32.totalorder %s35_s25, %s35_s25 }
   0xd   :  { %p1005_p3 = scmp.ne.s32.totalorder %s35_s25, %s1004_s12  ;;  %p1010_p5 = scmp.lt.s32.totalorder %s1004_s12, %s1004_s12 }
   0xf   :  { %p1011_p6 = por %p1010_p5, %p1009_p4 }
  0x11   :  { %p1012_p7 = pnand %p1011_p6, %p1005_p3 }
  0x13   :  { %1015 = shalt.err (!%p1012_p7)
}
  0x14   :  { %s1182_s13 = smov 64   ;;  %s1183_s14 = smov 4  }
  0x15   :  { %40 = dma.hbm_to_vmem [thread:$0]  %s1437_s1, 256, %s35_s25, [#allocation6], %s1182_s13, %s1182_s13, %s1183_s14  }
  0x16   :  { %s1016_s19 = scalar_lea.hbm %s1439_s3, 256 }
  0x17   :  { %p1017_p8 = scmp.ne.s32.totalorder %s1439_s3, %s1016_s19  ;;  %p1020_p9 = scmp.lt.u32.totalorder %s1016_s19, %s1439_s3 }
  0x19   :  { %p1022_p10 = pnand %p1020_p9, %p1017_p8 }
  0x1b   :  { %1025 = shalt.err (!%p1022_p10)
}
  0x1c   :  { %s1026_s24 = scalar_lea.vmem %s1235_s27, 256  ;;  %p1031_p12 = scmp.lt.s32.totalorder %s1235_s27, %s1235_s27 }
  0x1d   :  { %p1027_p11 = scmp.ne.s32.totalorder %s1235_s27, %s1026_s24  ;;  %p1032_p13 = scmp.lt.s32.totalorder %s1026_s24, %s1026_s24 }
  0x1f   :  { %p1033_p0 = por %p1032_p13, %p1031_p12 }
  0x21   :  { %p1034_p1 = pnand %p1033_p0, %p1027_p11 }
  0x23   :  { %1037 = shalt.err (!%p1034_p1)
}
  0x24   :  { %64 = dma.hbm_to_vmem [thread:$0]  %s1439_s3, 256, %s1235_s27, [#allocation9], %s1182_s13, %s1182_s13, %s1183_s14  }
  0x25   :  { %s1184_s26 = smov [#allocation11]   ;;  %s1185_s29 = smov [#allocation2]  }
  0x26   :  { %s80_s28 = sshll.u32 %s1184_s26, 4  ;;  %s22_s30 = sshll.u32 %s1185_s29, 4  ;;  %s81_s28 = int_to_ptr.vmem [resolvable:$true] %s80_s28  ;;  %s1272_s30 = int_to_ptr.vmem [resolvable:$true] %s22_s30 }
  0x27   :  { %s1038_s10 = scalar_lea.hbm %s1441_s5, 128 }
  0x28   :  { %p1039_p2 = scmp.ne.s32.totalorder %s1441_s5, %s1038_s10  ;;  %p1042_p3 = scmp.lt.u32.totalorder %s1038_s10, %s1441_s5 }
  0x2a   :  { %p1044_p4 = pnand %p1042_p3, %p1039_p2 }
  0x2c   :  { %1047 = shalt.err (!%p1044_p4)
}
  0x2d   :  { %s1048_s3 = scalar_lea.vmem %s81_s28, 128  ;;  %p1053_p6 = scmp.lt.s32.totalorder %s81_s28, %s81_s28 }
  0x2e   :  { %p1049_p5 = scmp.ne.s32.totalorder %s81_s28, %s1048_s3  ;;  %p1054_p7 = scmp.lt.s32.totalorder %s1048_s3, %s1048_s3 }
  0x30   :  { %p1055_p8 = por %p1054_p7, %p1053_p6 }
  0x32   :  { %p1056_p9 = pnand %p1055_p8, %p1049_p5 }
  0x34   :  { %1059 = shalt.err (!%p1056_p9)
}
  0x35   :  { %86 = dma.hbm_to_vmem [thread:$0]  %s1441_s5, 128, %s81_s28, [#allocation12], %s1182_s13, %s1182_s13, %s1183_s14  }
  0x36   :  { %s1060_s20 = scalar_lea.hbm %s1436_s0, 256 }
  0x37   :  { %p1061_p10 = scmp.ne.s32.totalorder %s1436_s0, %s1060_s20  ;;  %p1064_p11 = scmp.lt.u32.totalorder %s1060_s20, %s1436_s0 }
  0x39   :  { %p1066_p12 = pnand %p1064_p11, %p1061_p10 }
  0x3b   :  { %1069 = shalt.err (!%p1066_p12)
}
  0x3c   :  { %s1070_s1 = scalar_lea.vmem %s1272_s30, 256  ;;  %p1075_p0 = scmp.lt.s32.totalorder %s1272_s30, %s1272_s30 }
  0x3d   :  { %p1071_p13 = scmp.ne.s32.totalorder %s1272_s30, %s1070_s1  ;;  %p1076_p1 = scmp.lt.s32.totalorder %s1070_s1, %s1070_s1 }
  0x3f   :  { %p1077_p2 = por %p1076_p1, %p1075_p0 }
  0x41   :  { %p1078_p3 = pnand %p1077_p2, %p1071_p13 }
  0x43   :  { %1081 = shalt.err (!%p1078_p3)
}
  0x44   :  { %28 = dma.hbm_to_vmem [thread:$0]  %s1436_s0, 256, %s1272_s30, [#allocation3], %s1182_s13, %s1182_s13, %s1183_s14  }
  0x45   :  { %s1186_s26 = smov [#allocation7]   ;;  %s1082_s9 = scalar_lea.hbm %s1438_s2, 64 }
  0x46   :  { %s46_s28 = sshll.u32 %s1186_s26, 4  ;;  %p1083_p4 = scmp.ne.s32.totalorder %s1438_s2, %s1082_s9  ;;  %s47_s28 = int_to_ptr.vmem [resolvable:$true] %s46_s28 }
  0x47   :  { %p1086_p5 = scmp.lt.u32.totalorder %s1082_s9, %s1438_s2 }
  0x49   :  { %p1088_p6 = pnand %p1086_p5, %p1083_p4 }
  0x4b   :  { %1091 = shalt.err (!%p1088_p6)
}
  0x4c   :  { %s1092_s16 = scalar_lea.vmem %s47_s28, 64  ;;  %p1097_p8 = scmp.lt.s32.totalorder %s47_s28, %s47_s28 }
  0x4d   :  { %p1093_p7 = scmp.ne.s32.totalorder %s47_s28, %s1092_s16  ;;  %p1098_p9 = scmp.lt.s32.totalorder %s1092_s16, %s1092_s16 }
  0x4f   :  { %p1099_p10 = por %p1098_p9, %p1097_p8 }
  0x51   :  { %p1100_p11 = pnand %p1099_p10, %p1093_p7 }
  0x53   :  { %1103 = shalt.err (!%p1100_p11)
}
  0x54   :  { %s1187_s0 = smov 32   ;;  %s1188_s30 = smov 2  }
  0x55   :  { %52 = dma.hbm_to_vmem [thread:$0]  %s1438_s2, 64, %s47_s28, [#allocation6], %s1187_s0, %s1187_s0, %s1188_s30  }
  0x56   :  { %s1189_s17 = smov [#allocation10]   ;;  %s1190_s19 = smov [#allocation13]  }
  0x57   :  { %s71_s18 = sshll.u32 %s1189_s17, 4  ;;  %s92_s20 = sshll.u32 %s1190_s19, 4  ;;  %s72_s18 = int_to_ptr.vmem [resolvable:$true] %s71_s18  ;;  %s93_s20 = int_to_ptr.vmem [resolvable:$true] %s92_s20 }
  0x58   :  { %s1104_s23 = scalar_lea.hbm %s1440_s4, 64 }
  0x59   :  { %p1105_p12 = scmp.ne.s32.totalorder %s1440_s4, %s1104_s23  ;;  %p1108_p13 = scmp.lt.u32.totalorder %s1104_s23, %s1440_s4 }
  0x5b   :  { %p1110_p0 = pnand %p1108_p13, %p1105_p12 }
  0x5d   :  { %1113 = shalt.err (!%p1110_p0)
}
  0x5e   :  { %s1114_s2 = scalar_lea.vmem %s72_s18, 64  ;;  %p1119_p2 = scmp.lt.s32.totalorder %s72_s18, %s72_s18 }
  0x5f   :  { %p1115_p1 = scmp.ne.s32.totalorder %s72_s18, %s1114_s2  ;;  %p1120_p3 = scmp.lt.s32.totalorder %s1114_s2, %s1114_s2 }
  0x61   :  { %p1121_p4 = por %p1120_p3, %p1119_p2 }
  0x63   :  { %p1122_p5 = pnand %p1121_p4, %p1115_p1 }
  0x65   :  { %1125 = shalt.err (!%p1122_p5)
}
  0x66   :  { %74 = dma.hbm_to_vmem [thread:$0]  %s1440_s4, 64, %s72_s18, [#allocation9]  }
  0x67   :  { %s1126_s9 = scalar_lea.hbm %s1442_s6, 256 }
  0x68   :  { %p1127_p6 = scmp.ne.s32.totalorder %s1442_s6, %s1126_s9  ;;  %p1130_p7 = scmp.lt.u32.totalorder %s1126_s9, %s1442_s6 }
  0x6a   :  { %p1132_p8 = pnand %p1130_p7, %p1127_p6 }
  0x6c   :  { %1135 = shalt.err (!%p1132_p8)
}
  0x6d   :  { %s1136_s16 = scalar_lea.vmem %s93_s20, 256  ;;  %p1141_p10 = scmp.lt.s32.totalorder %s93_s20, %s93_s20 }
  0x6e   :  { %p1137_p9 = scmp.ne.s32.totalorder %s93_s20, %s1136_s16  ;;  %p1142_p11 = scmp.lt.s32.totalorder %s1136_s16, %s1136_s16 }
  0x70   :  { %p1143_p12 = por %p1142_p11, %p1141_p10 }
  0x72   :  { %p1144_p13 = pnand %p1143_p12, %p1137_p9 }
  0x74   :  { %1147 = shalt.err (!%p1144_p13)
}
  0x75   :  { %98 = dma.hbm_to_vmem [thread:$0]  %s1442_s6, 256, %s93_s20, [#allocation12], %s1182_s13, %s1182_s13, %s1183_s14  }
  0x76   :  { %1170 = dma.done.wait [#allocation3], 256  }
  0x77   :  { %1171 = vsyncadd [#allocation3], 4294967040 }
  0x78   :  { %1172 = dma.done.wait [#allocation6], 320  }
  0x79   :  { %1173 = vsyncadd [#allocation6], 4294966976 }
  0x7a   :  { %1174 = dma.done.wait [#allocation9], 320  }
  0x7b   :  { %1175 = vsyncadd [#allocation9], 4294966976 }
  0x7c   :  { %1176 = dma.done.wait [#allocation12], 384  }
  0x7d   :  { %1177 = vsyncadd [#allocation12], 4294966912  ;;  %v1191_v0 = vmov 0.0   ;;  %vm1192_vm0 = vmmov 0   ;;  %v985_v1 = vld [vmem:[#allocation8] sm:$0xff]   ;;  %vm152_vm1 = vcmask 130048  }
  0x7e   :  { %886 = vmatprep.subr.bf16.mxu0 %v1191_v0  ;;  %888 = vmatprep.mubr.msk.bf16.mxu0 %vm1192_vm0, %v1191_v0  ;;  %v986_v2 = vld [vmem:[#allocation2] sm:$0xff]   ;;  %v833_v3 = vld [vmem:[#allocation10] ss:$0 sm:$0xff]  ;;  %v988_v12 = vld [vmem:[#allocation11] sm:$0xff]   ;;  %vm317_vm2 = vcmask 261120   ;;  %v1193_v35 = vmov 0.0|0.0  }
  0x7f   :  { %892 = vmatprep.subr.bf16.mxu1 %v1191_v0  ;;  %894 = vmatprep.mubr.msk.bf16.mxu1 %vm1192_vm0, %v1191_v0  ;;  %v987_v11 = vld [vmem:[#allocation5] sm:$0xff]   ;;  %v1369_v18 = vld [vmem:[#allocation13] sm:$0xff]   ;;  %v1373_v19 = vld [vmem:[#allocation13 + $0x8] sm:$0xff]   ;;  %vm481_vm3 = vcmask 254976   ;;  %s1194_s6 = smov [#allocation14]  }
  0x80   :  { %887 = vmatpush3.bf16.msra.mxu0 %v985_v1  ;;  %v1376_v20 = vld [vmem:[#allocation10 + $0x2] ss:$0 sm:$0xff]  ;;  %v1387_v36 = vld [vmem:[#allocation10 + $0x3] ss:$0 sm:$0xff]  ;;  %v133_v44 = vld [vmem:[#allocation7] sm:$0x3] }
  0x81   :  { %898 = vmatprep.subr.bf16.mxu0 %v1191_v0  ;;  %v991_v45 = vld [vmem:[#allocation8 + $0x8] sm:$0xff]   ;;  %v848_v49 = vld [vmem:[#allocation10 + $0x1] ss:$0 sm:$0xff]  ;;  %v993_v57 = vld [vmem:[#allocation5 + $0x8] sm:$0xff]   ;;  %s818_s13 = sshll.u32 %s1194_s6, 4  ;;  %s819_s13 = int_to_ptr.vmem [resolvable:$true] %s818_s13 }
  0x82   :  { %v992_v46 = vld [vmem:[#allocation2 + $0x8] sm:$0xff]   ;;  %s1148_s14 = scalar_lea.vmem %s819_s13, 64  ;;  %p1153_p1 = scmp.lt.s32.totalorder %s819_s13, %s819_s13 }
  0x83   :  { %889 = vmatmul.mubr.msk.bf16.vlgmr.msra.gmra.mrb[0].mxu0 %vm152_vm1, %v986_v2  ;;  %p1149_p0 = scmp.ne.s32.totalorder %s819_s13, %s1148_s14  ;;  %p1154_p2 = scmp.lt.s32.totalorder %s1148_s14, %s1148_s14 }
  0x84   :  { %900 = vmatprep.mubr.msk.bf16.mxu0 %vm1192_vm0, %v1191_v0  ;;  %899 = vmatpush3.bf16.msra.mxu0 %v988_v12 }
  0x85   :  { %912 = vmatprep.subr.bf16.mxu0 %v1191_v0  ;;  %p1155_p3 = por %p1154_p2, %p1153_p1 }
  0x87   :  { %p1156_p4 = pnand %p1155_p3, %p1149_p0 }
 0x156   :  { %v190_v4 = vpop.f32.mrb[0].mxu0 }
 0x157   :  { %v890_v5 = vpop.f32.mrb[1].mxu0  ;;  %v191_v7 = vadd.f32 %v833_v3, %v190_v4 }
 0x158   :  { %v193_v6 = vpop.f32.mrb[2].mxu0 }
 0x159   :  { %v194_v8 = vadd.f32 %v833_v3, %v193_v6  ;;  %v891_v9 = vpop.f32.mrb[3].mxu0 }
 0x15b   :  { %v197_v10 = vpack.c.bf16 %v194_v8, %v191_v7 }
 0x15d   :  { %893 = vmatpush3.bf16.msra.mxu1 %v197_v10 }
 0x15e   :  { %904 = vmatprep.subr.bf16.mxu1 %v1191_v0 }
 0x160   :  { %895 = vmatmul.mubr.msk.bf16.vlgmr.msra.gmra.mrb[0].mxu1 %vm152_vm1, %v987_v11 }
 0x161   :  { %908 = vmatprep.mubr.msk.bf16.mxu1 %vm1192_vm0, %v1191_v0  ;;  %905 = vmatpush3.bf16.msra.mxu1 %v1369_v18 }
 0x162   :  { %906 = vmatprep.subr.bf16.mxu1 %v1191_v0 }
 0x165   :  { %907 = vmatpush3.bf16.msra.mxu1 %v1373_v19 }
 0x166   :  { %964 = vmatprep.subr.bf16.mxu1 %v1193_v35 }
 0x233   :  { %v240_v13 = vpop.f32.mrb[0].mxu1 }
 0x234   :  { %v896_v14 = vpop.f32.mrb[1].mxu1 }
 0x235   :  { %v243_v15 = vpop.f32.mrb[2].mxu1 }
 0x236   :  { %v247_v16 = vpack.c.bf16 %v243_v15, %v240_v13  ;;  %v897_v17 = vpop.f32.mrb[3].mxu1 }
 0x238   :  { %901 = vmatmul.mubr.msk.bf16.vlgmr.msra.gmra.mrb[4].mxu0 %vm152_vm1, %v247_v16 }
 0x239   :  { %914 = vmatprep.mubr.msk.bf16.mxu0 %vm1192_vm0, %v1191_v0 }
 0x30b   :  { %v295_v21 = vpop.f32.mrb[4].mxu0 }
 0x30c   :  { %v296_v22 = vadd.f32 %v1376_v20, %v295_v21  ;;  %v902_v23 = vpop.f32.mrb[5].mxu0  ;;  %v490_v21 = vld [vmem:[#allocation7 + $0x2] sm:$0x3] }
 0x30d   :  { %v298_v24 = vpop.f32.mrb[6].mxu0 }
 0x30e   :  { %v299_v25 = vadd.f32 %v1376_v20, %v298_v24  ;;  %v903_v26 = vpop.f32.mrb[7].mxu0  ;;  %v302_v27 = vmax.f32 %v296_v22, 0.0 }
 0x310   :  { %v303_v28 = vmax.f32 %v299_v25, 0.0 }
 0x312   :  { %v304_v29 = vpack.c.bf16 %v303_v28, %v302_v27 }
 0x314   :  { %909 = vmatmul.mubr.msk.bf16.vlgmr.msra.gmra.mrb[4].mxu1 %vm317_vm2, %v304_v29 }
 0x315   :  { %922 = vmatprep.mubr.msk.f32.mxu1 %vm1192_vm0, %v1191_v0 }
 0x3e7   :  { %v355_v30 = vpop.f32.mrb[4].mxu1 }
 0x3e8   :  { %v910_v31 = vpop.f32.mrb[5].mxu1 }
 0x3e9   :  { %v358_v32 = vpop.f32.mrb[6].mxu1 }
 0x3ea   :  { %v362_v33 = vpack.c.bf16 %v358_v32, %v355_v30  ;;  %v911_v34 = vpop.f32.mrb[7].mxu1 }
 0x3ec   :  { %913 = vmatpush3.bf16.msra.mxu0 %v362_v33 }
 0x3ed   :  { %931 = vmatprep.subr.bf16.mxu0 %v1191_v0 }
 0x3ef   :  { %915 = vmatmul.mubr.msk.bf16.vlgmr.msra.gmra.mrb[8].mxu0 %vm152_vm1, %v987_v11 }
 0x3f0   :  { %933 = vmatprep.mubr.msk.bf16.mxu0 %vm1192_vm0, %v1191_v0 }
 0x4c2   :  { %v401_v37 = vpop.f32.mrb[8].mxu0 }
 0x4c3   :  { %v916_v38 = vpop.f32.mrb[9].mxu0  ;;  %v402_v40 = vadd.f32 %v1387_v36, %v401_v37 }
 0x4c4   :  { %v404_v39 = vpop.f32.mrb[10].mxu0 }
 0x4c5   :  { %v405_v41 = vadd.f32 %v1387_v36, %v404_v39  ;;  %v917_v42 = vpop.f32.mrb[11].mxu0 }
 0x4c7   :  { %v965_v43 = vpack.c.bf16 %v405_v41, %v402_v40 }
 0x4c9   :  { %966 = vmatpush3.bf16.msra.mxu1 %v965_v43 }
 0x4ca   :  { %925 = vmatprep.subr.bf16.mxu1 %v1191_v0 }
 0x4cc   :  { %923 = vmatmul.mubr.msk.f32.vlgmr.msra.gmra.mrb[8].mxu1 %vm152_vm1, %v133_v44 }
 0x4cd   :  { %926 = vmatpush3.bf16.msra.mxu1 %v991_v45  ;;  %927 = vmatprep.mubr.msk.bf16.mxu1 %vm1192_vm0, %v1191_v0 }
 0x4ce   :  { %937 = vmatprep.subr.bf16.mxu1 %v1191_v0 }
 0x4d0   :  { %928 = vmatmul.mubr.msk.bf16.vlgmr.msra.gmra.mrb[12].mxu1 %vm152_vm1, %v992_v46 }
 0x4d1   :  { %938 = vmatpush3.bf16.msra.mxu1 %v988_v12  ;;  %939 = vmatprep.mubr.msk.bf16.mxu1 %vm1192_vm0, %v1191_v0 }
 0x4d2   :  { %951 = vmatprep.subr.bf16.mxu1 %v1191_v0 }
 0x59f   :  { %v477_v47 = vpop.f32.mrb[8].mxu1 }
 0x5a0   :  { %482 = vst.msk [vmem:[#allocation14] sm:$0x3] %vm481_vm3, %v477_v47  ;;  %v924_v48 = vpop.f32.mrb[9].mxu1 }
 0x5a3   :  { %v547_v50 = vpop.f32.mrb[12].mxu1 }
 0x5a4   :  { %v929_v51 = vpop.f32.mrb[13].mxu1  ;;  %v548_v53 = vadd.f32 %v848_v49, %v547_v50 }
 0x5a5   :  { %v550_v52 = vpop.f32.mrb[14].mxu1 }
 0x5a6   :  { %v551_v54 = vadd.f32 %v848_v49, %v550_v52  ;;  %v930_v55 = vpop.f32.mrb[15].mxu1 }
 0x5a8   :  { %v554_v56 = vpack.c.bf16 %v551_v54, %v548_v53 }
 0x5aa   :  { %932 = vmatpush3.bf16.msra.mxu0 %v554_v56 }
 0x5ab   :  { %943 = vmatprep.subr.bf16.mxu0 %v1191_v0 }
 0x5ad   :  { %934 = vmatmul.mubr.msk.bf16.vlgmr.msra.gmra.mrb[12].mxu0 %vm152_vm1, %v993_v57 }
 0x5ae   :  { %944 = vmatpush3.bf16.msra.mxu0 %v1369_v18  ;;  %947 = vmatprep.mubr.msk.bf16.mxu0 %vm1192_vm0, %v1191_v0 }
 0x5af   :  { %945 = vmatprep.subr.bf16.mxu0 %v1191_v0 }
 0x5b2   :  { %946 = vmatpush3.bf16.msra.mxu0 %v1373_v19 }
 0x5b3   :  { %967 = vmatprep.subr.bf16.mxu0 %v1193_v35 }
 0x680   :  { %v597_v58 = vpop.f32.mrb[12].mxu0 }
 0x681   :  { %v935_v59 = vpop.f32.mrb[13].mxu0 }
 0x682   :  { %v600_v60 = vpop.f32.mrb[14].mxu0 }
 0x683   :  { %v604_v61 = vpack.c.bf16 %v600_v60, %v597_v58  ;;  %v936_v62 = vpop.f32.mrb[15].mxu0 }
 0x685   :  { %940 = vmatmul.mubr.msk.bf16.vlgmr.msra.gmra.mrb[16].mxu1 %vm152_vm1, %v604_v61 }
 0x686   :  { %953 = vmatprep.mubr.msk.bf16.mxu1 %vm1192_vm0, %v1191_v0 }
 0x758   :  { %v642_v63 = vpop.f32.mrb[16].mxu1 }
 0x759   :  { %v643_v1 = vadd.f32 %v1376_v20, %v642_v63  ;;  %v941_v2 = vpop.f32.mrb[17].mxu1 }
 0x75a   :  { %v645_v3 = vpop.f32.mrb[18].mxu1 }
 0x75b   :  { %v646_v4 = vadd.f32 %v1376_v20, %v645_v3  ;;  %v942_v5 = vpop.f32.mrb[19].mxu1  ;;  %v649_v6 = vmax.f32 %v643_v1, 0.0 }
 0x75d   :  { %v650_v7 = vmax.f32 %v646_v4, 0.0 }
 0x75f   :  { %v651_v8 = vpack.c.bf16 %v650_v7, %v649_v6 }
 0x761   :  { %948 = vmatmul.mubr.msk.bf16.vlgmr.msra.gmra.mrb[16].mxu0 %vm317_vm2, %v651_v8 }
 0x762   :  { %961 = vmatprep.mubr.msk.f32.mxu0 %vm1192_vm0, %v1191_v0 }
 0x834   :  { %v689_v9 = vpop.f32.mrb[16].mxu0 }
 0x835   :  { %v949_v10 = vpop.f32.mrb[17].mxu0 }
 0x836   :  { %v692_v11 = vpop.f32.mrb[18].mxu0 }
 0x837   :  { %v696_v12 = vpack.c.bf16 %v692_v11, %v689_v9  ;;  %v950_v13 = vpop.f32.mrb[19].mxu0 }
 0x839   :  { %952 = vmatpush3.bf16.msra.mxu1 %v696_v12 }
 0x83c   :  { %954 = vmatmul.mubr.msk.bf16.vlgmr.msra.gmra.mrb[20].mxu1 %vm152_vm1, %v993_v57 }
 0x90f   :  { %v731_v14 = vpop.f32.mrb[20].mxu1 }
 0x910   :  { %v955_v15 = vpop.f32.mrb[21].mxu1  ;;  %v732_v17 = vadd.f32 %v1387_v36, %v731_v14 }
 0x911   :  { %v734_v16 = vpop.f32.mrb[22].mxu1 }
 0x912   :  { %v735_v18 = vadd.f32 %v1387_v36, %v734_v16  ;;  %v956_v19 = vpop.f32.mrb[23].mxu1 }
 0x914   :  { %v968_v20 = vpack.c.bf16 %v735_v18, %v732_v17 }
 0x916   :  { %969 = vmatpush3.bf16.msra.mxu0 %v968_v20 }
 0x919   :  { %962 = vmatmul.mubr.msk.f32.vlgmr.msra.gmra.mrb[20].mxu0 %vm152_vm1, %v490_v21 }
 0x9ec   :  { %v807_v0 = vpop.f32.mrb[20].mxu0 }
 0x9ed   :  { %812 = vst.msk [vmem:[#allocation14 + $0x2] sm:$0x3] %vm481_vm3, %v807_v0  ;;  %v963_v22 = vpop.f32.mrb[21].mxu0 }
 0x9ee   :  { %1159 = shalt.err (!%p1156_p4)
}
 0x9ef   :  { %s1160_s18 = scalar_lea.hbm %s1443_s7, 64 }
 0x9f0   :  { %p1161_p5 = scmp.ne.s32.totalorder %s1443_s7, %s1160_s18  ;;  %p1164_p6 = scmp.lt.u32.totalorder %s1160_s18, %s1443_s7 }
 0x9f2   :  { %p1166_p7 = pnand %p1164_p6, %p1161_p5 }
 0x9f4   :  { %1169 = shalt.err (!%p1166_p7)
}
 0x9f5   :  { %824 = dma.vmem_to_hbm [thread:$0]  %s819_s13, 64, %s1443_s7, [#allocation4], %s1187_s0, %s1187_s0, %s1188_s30  }
 0x9f6   :  { %1178 = dma.done.wait [#allocation4], 64  }
 0x9f7   :  { %1179 = vsyncadd [#allocation4], 4294967232 }
 0x9f8   :  { %828 = vsyncpa [#allocation3], 1 }
 0x9f9   :  { %829 = vsyncpa [#allocation6], 1 }
 0x9fa   :  { %830 = vsyncpa [#allocation9], 1 }
 0x9fb   :  { %831 = vsyncpa [#allocation12], 1 }
 0x9fc   :  { %832 = vsyncpa [#allocation4], 1 }

</bundles_post_ra>
